<compile_context>
chip_gen: v5e
topology: v5e:2x2
jax: 0.10.0
libtpu: 0.0.40
codegen_flags: <defaults>
</compile_context>

<pallas_src>
import functools
import math
import numpy as np
import jax
import jax.numpy as jnp
from jax import lax
from jax.experimental import pallas as pl
from jax.experimental.pallas import tpu as pltpu

MOD = 2
OUT1 = MOD * 4   # conv1: out_w = out_x = 8
OUT2 = MOD * 2   # conv2: out_w = out_x = 4
EPS = 1e-8

# ---- packed parameter slab: one (8,128)-padded f32 tile, entries along lanes ----
# slot:  0 v1xw | 1 v1xb | 2-3 wc1 | 4-5 bc1 | 6 e1xw | 7 e1xb | 8 v2xw | 9 v2xb
#       10 wc2 | 11 bc2 | 12 e2xw | 13 e2xb | 14 outb
SLAB_STRIDE = 8        # columns per slot
SLAB_ROWS = 8          # sublanes (max fan-in of any packed weight)
SLOT_V1XW, SLOT_V1XB = 0, 1
SLOT_WC1, SLOT_BC1 = 2, 4        # fused conv1 w-projection: [v1ww | e1ww], 16 cols
SLOT_E1XW, SLOT_E1XB = 6, 7
SLOT_V2XW, SLOT_V2XB = 8, 9
SLOT_WC2, SLOT_BC2 = 10, 11      # fused conv2 w-projection: [v2ww | e2ww], 8 cols
SLOT_E2XW, SLOT_E2XB = 12, 13
SLOT_OUTB = 14
N_SLOTS = 15
SLAB_COLS = N_SLOTS * SLAB_STRIDE        # 120 -> pads to one 128-lane tile


def mpnet_kernel(g_dim, f_dim, x_ref, wsc_ref, H_ref, slab_ref, o_ref):
    f32 = jnp.float32
    bf16 = jnp.bfloat16
    x = x_ref[...]                             # [N, G]            f32
    wsc = wsc_ref[...]                         # [M, F + OUT2]     f32  : [w | scomb]
    w = wsc[:, 0:f_dim]
    scomb = wsc[:, f_dim:f_dim + OUT2]
    Hb = H_ref[...]                            # [N, M]            bf16 (exact 0/1 counts)
    P = slab_ref[...]                          # [8, 120] packed params (one vreg tile)

    def ld(slot, rows, cols):                  # static lane sub-range of the slab tile
        c0 = slot * SLAB_STRIDE
        return P[0:rows, c0:c0 + cols]

    v1xw = ld(SLOT_V1XW, g_dim, OUT1); v1xb = ld(SLOT_V1XB, 1, OUT1)
    wc1 = ld(SLOT_WC1, f_dim, 2 * OUT1); bc1 = ld(SLOT_BC1, 1, 2 * OUT1)
    e1xw = ld(SLOT_E1XW, OUT1, OUT1);   e1xb = ld(SLOT_E1XB, 1, OUT1)
    v2xw = ld(SLOT_V2XW, OUT1, OUT2);   v2xb = ld(SLOT_V2XB, 1, OUT2)
    wc2 = ld(SLOT_WC2, OUT1, 2 * OUT2); bc2 = ld(SLOT_BC2, 1, 2 * OUT2)
    e2xw = ld(SLOT_E2XW, OUT2, OUT2);   e2xb = ld(SLOT_E2XB, 1, OUT2)
    outb = ld(SLOT_OUTB, 1, 1)

    # bf16 H consumed directly by the MXU; only the THIN activation operand is cast
    # to bf16 (single-pass bf16 matmul, f32 accumulation).  No f32 copy of H exists.
    def agg_vertex(feat):                      # H @ feat : hyperedge -> node scatter-add
        return jnp.dot(Hb, feat.astype(bf16), preferred_element_type=f32)

    def agg_edge(feat):                        # H^T @ feat : node -> hyperedge scatter-add
        # Contracts the node axis of H directly (no materialized H^T operand).
        # TODO(synk): at scaled N,M check with pl.lower_as_mlir that this does not
        # lower to a full H-tile XLU transpose; if it does, restructure as
        # (feat^T @ H)^T so only the thin [*, OUT] operands are transposed.
        return lax.dot_general(Hb, feat.astype(bf16), (((0,), (0,)), ((), ())),
                               preferred_element_type=f32)

    # ------------------------------ HyperEConv 1 ------------------------------
    xl1 = jnp.dot(x, v1xw, preferred_element_type=f32) + v1xb
    wproj1 = jnp.dot(w, wc1, preferred_element_type=f32) + bc1        # [M, 2*OUT1]
    wl1 = wproj1[:, 0:OUT1]
    we1 = wproj1[:, OUT1:2 * OUT1]
    x1p = xl1 + agg_vertex(wl1) * xl1          # pre-sigmoid node update (feeds mte.lin_x)
    xe1 = jnp.dot(x1p, e1xw, preferred_element_type=f32) + e1xb
    w1p = we1 + agg_edge(xe1) * we1            # pre-sigmoid hyperedge update
    x1 = jax.nn.sigmoid(x1p)
    w1 = jax.nn.sigmoid(w1p)

    # ------------------------------ HyperEConv 2 ------------------------------
    xl2 = jnp.dot(x1, v2xw, preferred_element_type=f32) + v2xb
    wproj2 = jnp.dot(w1, wc2, preferred_element_type=f32) + bc2       # [M, 2*OUT2]
    wl2 = wproj2[:, 0:OUT2]
    we2 = wproj2[:, OUT2:2 * OUT2]
    x2p = xl2 + agg_vertex(wl2) * xl2
    xe2 = jnp.dot(x2p, e2xw, preferred_element_type=f32) + e2xb
    w2 = jax.nn.sigmoid(we2 + agg_edge(xe2) * we2)                    # [M, OUT2]

    # ------------- similarity / output head (collapsed into scomb) ------------
    ss_w = jnp.sum(w2 * w2)                        # ||flatten(w2)||^2
    dotv = jnp.sum(w2 * scomb)                     # <flatten(w2), scomb_flat>
    inv_norm = lax.rsqrt(jnp.maximum(ss_w, EPS * EPS))   # == 1 / max(||w2||, eps)
    logit = outb + dotv * inv_norm                 # [1, 1]
    o_ref[0] = jnp.sum(jax.nn.sigmoid(logit))      # scalar store into SMEM output


# ----------------------------- parameter handling ------------------------------
def linear_params(key, fan_in, fan_out):
    """Deterministic torch.nn.Linear-style init; returns (W^T [in,out], b [1,out])."""
    kw, kb = jax.random.split(key)
    bound = 1.0 / math.sqrt(fan_in)
    w = jax.random.uniform(kw, (fan_out, fan_in), jnp.float32, -bound, bound)
    b = jax.random.uniform(kb, (fan_out,), jnp.float32, -bound, bound)
    return [w.T, b.reshape(1, fan_out)]


def init_params(key, G, Fdim, n_sim):
    ks = jax.random.split(key, 9)
    p = []
    p += linear_params(ks[0], G, OUT1)        # c1.mtx.lin_x
    p += linear_params(ks[1], Fdim, OUT1)     # c1.mtx.lin_w
    p += linear_params(ks[2], OUT1, OUT1)     # c1.mte.lin_x (in = c1 out_x)
    p += linear_params(ks[3], Fdim, OUT1)     # c1.mte.lin_w
    p += linear_params(ks[4], OUT1, OUT2)     # c2.mtx.lin_x
    p += linear_params(ks[5], OUT1, OUT2)     # c2.mtx.lin_w
    p += linear_params(ks[6], OUT2, OUT2)     # c2.mte.lin_x (in = c2 out_x)
    p += linear_params(ks[7], OUT1, OUT2)     # c2.mte.lin_w
    p += linear_params(ks[8], 3 * n_sim, 1)   # output Linear(3*S, 1)
    return tuple(p)


def pack_params(params):
    """Pack all conv weights/biases (+ output bias) into ONE lane-dense [8,120] slab."""
    (v1xw, v1xb, v1ww, v1wb, e1xw, e1xb, e1ww, e1wb,
     v2xw, v2xb, v2ww, v2wb, e2xw, e2xb, e2ww, e2wb, outw, outb) = params
    wc1 = jnp.concatenate([v1ww, e1ww], axis=1)   # [F, 2*OUT1]
    bc1 = jnp.concatenate([v1wb, e1wb], axis=1)   # [1, 2*OUT1]
    wc2 = jnp.concatenate([v2ww, e2ww], axis=1)   # [OUT1, 2*OUT2]
    bc2 = jnp.concatenate([v2wb, e2wb], axis=1)   # [1, 2*OUT2]
    entries = [v1xw, v1xb, wc1, bc1, e1xw, e1xb, v2xw, v2xb,
               wc2, bc2, e2xw, e2xb, outb]
    blocks = []
    for e in entries:
        r, c = e.shape
        width = SLAB_STRIDE * ((c + SLAB_STRIDE - 1) // SLAB_STRIDE)
        blocks.append(jnp.pad(e.astype(jnp.float32),
                              ((0, SLAB_ROWS - r), (0, width - c))))
    slab = jnp.concatenate(blocks, axis=1)        # single pad+concat, no .at[].set chain
    assert slab.shape == (SLAB_ROWS, SLAB_COLS)
    return slab


def build_scomb(sim_flat, outw, M):
    """Collapse the similarity head: s_comb = sum_i sim_i * wgrp_i / max(||sim_i||, eps)."""
    S = sim_flat.shape[0]
    wgrp = jnp.sum(outw[:, 0].reshape(S, 3), axis=1)                        # [S]
    norms = jnp.maximum(jnp.sqrt(jnp.sum(sim_flat * sim_flat, axis=1)), EPS)
    scomb = jnp.sum(sim_flat * (wgrp / norms)[:, None], axis=0)             # [M*OUT2]
    return scomb.reshape(M, OUT2)


def mpnet_prepare(params, h, sim_flat, num_nodes, num_edges):
    """Per-(params, graph structure, sim set) preprocessing, hoisted off the hot path."""
    H = (jnp.zeros((num_nodes, num_edges), jnp.float32)
         .at[h[0], h[1]].add(1.0)).astype(jnp.bfloat16)   # exact for small counts
    slab = pack_params(params)
    scomb = build_scomb(sim_flat, params[-2], num_edges)
    return H, slab, scomb


@jax.jit
def mpnet_forward(x, w, H, slab, scomb):
    N, G = x.shape
    M, Fdim = w.shape
    wsc = jnp.concatenate([w, scomb], axis=1)     # lane-dense hyperedge-side operand
    kernel = functools.partial(mpnet_kernel, G, Fdim)
    out = pl.pallas_call(
        kernel,
        out_shape=jax.ShapeDtypeStruct((1,), jnp.float32),
        in_specs=[pl.BlockSpec(memory_space=pltpu.MemorySpace.VMEM)] * 4,
        out_specs=pl.BlockSpec(memory_space=pltpu.MemorySpace.SMEM),
    )(x, wsc, H, slab)
    return out                                    # torch Flatten() -> shape [1]


# --------------------------------- reference ------------------------------------
def mpnet_reference(x, w, h, sim_flat, params):
    """Pure-JAX reference of the same forward pass (faithful to the torch module)."""
    (v1xw, v1xb, v1ww, v1wb, e1xw, e1xb, e1ww, e1wb,
     v2xw, v2xb, v2ww, v2wb, e2xw, e2xb, e2ww, e2wb, outw, outb) = params
    N, M = x.shape[0], w.shape[0]
    H = jnp.zeros((N, M), jnp.float32).at[h[0], h[1]].add(1.0)
    hp = jax.lax.Precision.HIGHEST

    def conv(x, w, vxw, vxb, vww, vwb, exw, exb, eww, ewb):
        xl = jnp.dot(x, vxw, precision=hp) + vxb
        wl = jnp.dot(w, vww, precision=hp) + vwb
        xn = xl + jnp.dot(H, wl, precision=hp) * xl
        xe = jnp.dot(xn, exw, precision=hp) + exb
        we = jnp.dot(w, eww, precision=hp) + ewb
        wn = we + jnp.dot(H.T, xe, precision=hp) * we
        return jax.nn.sigmoid(xn), jax.nn.sigmoid(wn)

    x1, w1 = conv(x, w, v1xw, v1xb, v1ww, v1wb, e1xw, e1xb, e1ww, e1wb)
    _, w2 = conv(x1, w1, v2xw, v2xb, v2ww, v2wb, e2xw, e2xb, e2ww, e2wb)
    flat = w2.reshape(-1)
    eps = 1e-8
    feats = []
    for i in range(sim_flat.shape[0]):
        si = sim_flat[i]
        cos = jnp.dot(flat, si, precision=hp) / (
            jnp.maximum(jnp.linalg.norm(flat), eps) *
            jnp.maximum(jnp.linalg.norm(si), eps))
        feats += [cos, cos, cos]
    feats = jnp.stack(feats)[None, :]
    logit = jnp.dot(feats, outw, precision=hp) + outb
    return jax.nn.sigmoid(logit).reshape(-1)


if __name__ == "__main__":
    key = jax.random.PRNGKey(0)
    N = 16      # nodes
    M = 16      # hyperedges
    G = 4       # node feature dim
    Fdim = 4    # hyperedge feature dim
    S = 3       # similarities

    kx, kw, ks, kp = jax.random.split(key, 4)
    x = jax.random.normal(kx, (N, G), jnp.float32)
    w = jax.random.normal(kw, (M, Fdim), jnp.float32)
    # Deterministic hypergraph incidence: node n -> hyperedges n % M and (3n+1) % M
    n_ids = np.arange(N)
    h = jnp.asarray(np.stack([np.concatenate([n_ids, n_ids]),
                              np.concatenate([n_ids % M, (3 * n_ids + 1) % M])]),
                    dtype=jnp.int32)
    # sim_mat as produced by set_comparisons (mode=-1 flattened w outputs): [S, M*OUT2]
    sim_flat = jax.random.normal(ks, (S, M * OUT2), jnp.float32)
    params = init_params(kp, G, Fdim, S)

    # One-time preprocessing (densified incidence, packed slab, collapsed sim head).
    H, slab, scomb = mpnet_prepare(params, h, sim_flat, N, M)

    out = jax.block_until_ready(mpnet_forward(x, w, H, slab, scomb))
    ref = mpnet_reference(x, w, h, sim_flat, params)
    assert out.shape == (1,)
    # 5e-3: aggregation matmuls run single-pass bf16xbf16 on the MXU (f32 accumulate)
    # vs. the HIGHEST-precision f32 reference; the output is a single sigmoid scalar.
    np.testing.assert_allclose(np.asarray(out), np.asarray(ref), rtol=5e-3, atol=5e-3)
    print("KERNEL_OK")
</pallas_src>

<mosaic_0001>
module attributes {stable_mosaic.version = 11 : i64} {
  func.func @mpnet_kernel(%arg0: memref<16x4xf32, #tpu.memory_space<vmem>>, %arg1: memref<16x8xf32, #tpu.memory_space<vmem>>, %arg2: memref<16x16xbf16, #tpu.memory_space<vmem>>, %arg3: memref<8x120xf32, #tpu.memory_space<vmem>>, %arg4: memref<1xf32, #tpu.memory_space<smem>>) attributes {dimension_semantics = [], scalar_prefetch = 0 : i64, scratch_operands = 0 : i64, tpu.core_type = #tpu.core_type<tc>} {
    %c0 = arith.constant 0 : index
    %c0_0 = arith.constant 0 : index
    %0 = vector.load %arg0[%c0, %c0_0] : memref<16x4xf32, #tpu.memory_space<vmem>>, vector<16x4xf32>
    %c0_1 = arith.constant 0 : index
    %c0_2 = arith.constant 0 : index
    %1 = vector.load %arg1[%c0_1, %c0_2] : memref<16x8xf32, #tpu.memory_space<vmem>>, vector<16x8xf32>
    %2 = vector.extract_strided_slice %1 {offsets = [0, 0], sizes = [16, 4], strides = [1, 1]} : vector<16x8xf32> to vector<16x4xf32>
    %3 = vector.extract_strided_slice %1 {offsets = [0, 4], sizes = [16, 4], strides = [1, 1]} : vector<16x8xf32> to vector<16x4xf32>
    %c0_3 = arith.constant 0 : index
    %c0_4 = arith.constant 0 : index
    %4 = vector.load %arg2[%c0_3, %c0_4] : memref<16x16xbf16, #tpu.memory_space<vmem>>, vector<16x16xbf16>
    %c0_5 = arith.constant 0 : index
    %c0_6 = arith.constant 0 : index
    %5 = vector.load %arg3[%c0_5, %c0_6] : memref<8x120xf32, #tpu.memory_space<vmem>>, vector<8x120xf32>
    %6 = vector.extract_strided_slice %5 {offsets = [0, 0], sizes = [4, 8], strides = [1, 1]} : vector<8x120xf32> to vector<4x8xf32>
    %7 = vector.extract_strided_slice %5 {offsets = [0, 8], sizes = [1, 8], strides = [1, 1]} : vector<8x120xf32> to vector<1x8xf32>
    %8 = vector.extract_strided_slice %5 {offsets = [0, 16], sizes = [4, 16], strides = [1, 1]} : vector<8x120xf32> to vector<4x16xf32>
    %9 = vector.extract_strided_slice %5 {offsets = [0, 32], sizes = [1, 16], strides = [1, 1]} : vector<8x120xf32> to vector<1x16xf32>
    %10 = vector.extract_strided_slice %5 {offsets = [0, 48], sizes = [8, 8], strides = [1, 1]} : vector<8x120xf32> to vector<8x8xf32>
    %11 = vector.extract_strided_slice %5 {offsets = [0, 56], sizes = [1, 8], strides = [1, 1]} : vector<8x120xf32> to vector<1x8xf32>
    %12 = vector.extract_strided_slice %5 {offsets = [0, 64], sizes = [8, 4], strides = [1, 1]} : vector<8x120xf32> to vector<8x4xf32>
    %13 = vector.extract_strided_slice %5 {offsets = [0, 72], sizes = [1, 4], strides = [1, 1]} : vector<8x120xf32> to vector<1x4xf32>
    %14 = vector.extract_strided_slice %5 {offsets = [0, 80], sizes = [8, 8], strides = [1, 1]} : vector<8x120xf32> to vector<8x8xf32>
    %15 = vector.extract_strided_slice %5 {offsets = [0, 88], sizes = [1, 8], strides = [1, 1]} : vector<8x120xf32> to vector<1x8xf32>
    %16 = vector.extract_strided_slice %5 {offsets = [0, 96], sizes = [4, 4], strides = [1, 1]} : vector<8x120xf32> to vector<4x4xf32>
    %17 = vector.extract_strided_slice %5 {offsets = [0, 104], sizes = [1, 4], strides = [1, 1]} : vector<8x120xf32> to vector<1x4xf32>
    %18 = vector.extract_strided_slice %5 {offsets = [0, 112], sizes = [1, 1], strides = [1, 1]} : vector<8x120xf32> to vector<1x1xf32>
    %cst = arith.constant dense<0.000000e+00> : vector<16x8xf32>
    %19 = tpu.matmul %0, %6, %cst {dimension_numbers = #tpu.dot_dimension_numbers<[1], [0], [0], [1], [0, 0, 1, 1], [], []>} : vector<16x4xf32>, vector<4x8xf32>, vector<16x8xf32> -> vector<16x8xf32>
    %20 = vector.broadcast %7 : vector<1x8xf32> to vector<16x8xf32>
    %21 = arith.addf %19, %20 : vector<16x8xf32>
    %cst_7 = arith.constant dense<0.000000e+00> : vector<16x16xf32>
    %22 = tpu.matmul %2, %8, %cst_7 {dimension_numbers = #tpu.dot_dimension_numbers<[1], [0], [0], [1], [0, 0, 1, 1], [], []>} : vector<16x4xf32>, vector<4x16xf32>, vector<16x16xf32> -> vector<16x16xf32>
    %23 = vector.broadcast %9 : vector<1x16xf32> to vector<16x16xf32>
    %24 = arith.addf %22, %23 : vector<16x16xf32>
    %25 = vector.extract_strided_slice %24 {offsets = [0, 0], sizes = [16, 8], strides = [1, 1]} : vector<16x16xf32> to vector<16x8xf32>
    %26 = vector.extract_strided_slice %24 {offsets = [0, 8], sizes = [16, 8], strides = [1, 1]} : vector<16x16xf32> to vector<16x8xf32>
    %27 = arith.truncf %25 : vector<16x8xf32> to vector<16x8xbf16>
    %cst_8 = arith.constant dense<0.000000e+00> : vector<16x8xf32>
    %28 = tpu.matmul %4, %27, %cst_8 {dimension_numbers = #tpu.dot_dimension_numbers<[1], [0], [0], [1], [0, 0, 1, 1], [], []>} : vector<16x16xbf16>, vector<16x8xbf16>, vector<16x8xf32> -> vector<16x8xf32>
    %29 = arith.mulf %28, %21 : vector<16x8xf32>
    %30 = arith.addf %21, %29 : vector<16x8xf32>
    %cst_9 = arith.constant dense<0.000000e+00> : vector<16x8xf32>
    %31 = tpu.matmul %30, %10, %cst_9 {dimension_numbers = #tpu.dot_dimension_numbers<[1], [0], [0], [1], [0, 0, 1, 1], [], []>} : vector<16x8xf32>, vector<8x8xf32>, vector<16x8xf32> -> vector<16x8xf32>
    %32 = vector.broadcast %11 : vector<1x8xf32> to vector<16x8xf32>
    %33 = arith.addf %31, %32 : vector<16x8xf32>
    %34 = arith.truncf %33 : vector<16x8xf32> to vector<16x8xbf16>
    %cst_10 = arith.constant dense<0.000000e+00> : vector<16x8xf32>
    %35 = tpu.matmul %4, %34, %cst_10 {dimension_numbers = #tpu.dot_dimension_numbers<[0], [0], [1], [1], [0, 1, 1, 1], [], []>} : vector<16x16xbf16>, vector<16x8xbf16>, vector<16x8xf32> -> vector<16x8xf32>
    %36 = arith.mulf %35, %26 : vector<16x8xf32>
    %37 = arith.addf %26, %36 : vector<16x8xf32>
    %38 = arith.negf %30 : vector<16x8xf32>
    %39 = math.exp %38 : vector<16x8xf32>
    %cst_11 = arith.constant 1.000000e+00 : f32
    %40 = vector.broadcast %cst_11 : f32 to vector<16x8xf32>
    %41 = arith.addf %40, %39 : vector<16x8xf32>
    %42 = arith.divf %40, %41 : vector<16x8xf32>
    %43 = arith.negf %37 : vector<16x8xf32>
    %44 = math.exp %43 : vector<16x8xf32>
    %cst_12 = arith.constant 1.000000e+00 : f32
    %45 = vector.broadcast %cst_12 : f32 to vector<16x8xf32>
    %46 = arith.addf %45, %44 : vector<16x8xf32>
    %47 = arith.divf %45, %46 : vector<16x8xf32>
    %cst_13 = arith.constant dense<0.000000e+00> : vector<16x4xf32>
    %48 = tpu.matmul %42, %12, %cst_13 {dimension_numbers = #tpu.dot_dimension_numbers<[1], [0], [0], [1], [0, 0, 1, 1], [], []>} : vector<16x8xf32>, vector<8x4xf32>, vector<16x4xf32> -> vector<16x4xf32>
    %49 = vector.broadcast %13 : vector<1x4xf32> to vector<16x4xf32>
    %50 = arith.addf %48, %49 : vector<16x4xf32>
    %cst_14 = arith.constant dense<0.000000e+00> : vector<16x8xf32>
    %51 = tpu.matmul %47, %14, %cst_14 {dimension_numbers = #tpu.dot_dimension_numbers<[1], [0], [0], [1], [0, 0, 1, 1], [], []>} : vector<16x8xf32>, vector<8x8xf32>, vector<16x8xf32> -> vector<16x8xf32>
    %52 = vector.broadcast %15 : vector<1x8xf32> to vector<16x8xf32>
    %53 = arith.addf %51, %52 : vector<16x8xf32>
    %54 = vector.extract_strided_slice %53 {offsets = [0, 0], sizes = [16, 4], strides = [1, 1]} : vector<16x8xf32> to vector<16x4xf32>
    %55 = vector.extract_strided_slice %53 {offsets = [0, 4], sizes = [16, 4], strides = [1, 1]} : vector<16x8xf32> to vector<16x4xf32>
    %56 = arith.truncf %54 : vector<16x4xf32> to vector<16x4xbf16>
    %cst_15 = arith.constant dense<0.000000e+00> : vector<16x4xf32>
    %57 = tpu.matmul %4, %56, %cst_15 {dimension_numbers = #tpu.dot_dimension_numbers<[1], [0], [0], [1], [0, 0, 1, 1], [], []>} : vector<16x16xbf16>, vector<16x4xbf16>, vector<16x4xf32> -> vector<16x4xf32>
    %58 = arith.mulf %57, %50 : vector<16x4xf32>
    %59 = arith.addf %50, %58 : vector<16x4xf32>
    %cst_16 = arith.constant dense<0.000000e+00> : vector<16x4xf32>
    %60 = tpu.matmul %59, %16, %cst_16 {dimension_numbers = #tpu.dot_dimension_numbers<[1], [0], [0], [1], [0, 0, 1, 1], [], []>} : vector<16x4xf32>, vector<4x4xf32>, vector<16x4xf32> -> vector<16x4xf32>
    %61 = vector.broadcast %17 : vector<1x4xf32> to vector<16x4xf32>
    %62 = arith.addf %60, %61 : vector<16x4xf32>
    %63 = arith.truncf %62 : vector<16x4xf32> to vector<16x4xbf16>
    %cst_17 = arith.constant dense<0.000000e+00> : vector<16x4xf32>
    %64 = tpu.matmul %4, %63, %cst_17 {dimension_numbers = #tpu.dot_dimension_numbers<[0], [0], [1], [1], [0, 1, 1, 1], [], []>} : vector<16x16xbf16>, vector<16x4xbf16>, vector<16x4xf32> -> vector<16x4xf32>
    %65 = arith.mulf %64, %55 : vector<16x4xf32>
    %66 = arith.addf %55, %65 : vector<16x4xf32>
    %67 = arith.negf %66 : vector<16x4xf32>
    %68 = math.exp %67 : vector<16x4xf32>
    %cst_18 = arith.constant 1.000000e+00 : f32
    %69 = vector.broadcast %cst_18 : f32 to vector<16x4xf32>
    %70 = arith.addf %69, %68 : vector<16x4xf32>
    %71 = arith.divf %69, %70 : vector<16x4xf32>
    %72 = arith.mulf %71, %71 : vector<16x4xf32>
    %73 = vector.shape_cast %72 : vector<16x4xf32> to vector<1x16x4xf32>
    %cst_19 = arith.constant dense<0.000000e+00> : vector<1xf32>
    %74 = vector.multi_reduction <add>, %73, %cst_19 [1, 2] : vector<1x16x4xf32> to vector<1xf32>
    %75 = vector.shape_cast %74 : vector<1xf32> to vector<1x1x1xf32>
    %76 = vector.extract %75[0, 0, 0] : f32 from vector<1x1x1xf32>
    %77 = arith.mulf %71, %3 : vector<16x4xf32>
    %78 = vector.shape_cast %77 : vector<16x4xf32> to vector<1x16x4xf32>
    %cst_20 = arith.constant dense<0.000000e+00> : vector<1xf32>
    %79 = vector.multi_reduction <add>, %78, %cst_20 [1, 2] : vector<1x16x4xf32> to vector<1xf32>
    %80 = vector.shape_cast %79 : vector<1xf32> to vector<1x1x1xf32>
    %81 = vector.extract %80[0, 0, 0] : f32 from vector<1x1x1xf32>
    %cst_21 = arith.constant 1.000000e-16 : f32
    %82 = arith.maximumf %76, %cst_21 : f32
    %83 = math.rsqrt %82 : f32
    %84 = arith.mulf %81, %83 : f32
    %85 = vector.broadcast %84 : f32 to vector<1x1xf32>
    %86 = arith.addf %18, %85 : vector<1x1xf32>
    %87 = arith.negf %86 : vector<1x1xf32>
    %88 = math.exp %87 : vector<1x1xf32>
    %cst_22 = arith.constant 1.000000e+00 : f32
    %89 = vector.broadcast %cst_22 : f32 to vector<1x1xf32>
    %90 = arith.addf %89, %88 : vector<1x1xf32>
    %91 = arith.divf %89, %90 : vector<1x1xf32>
    %92 = vector.shape_cast %91 : vector<1x1xf32> to vector<1x1x1xf32>
    %cst_23 = arith.constant dense<0.000000e+00> : vector<1xf32>
    %93 = vector.multi_reduction <add>, %92, %cst_23 [1, 2] : vector<1x1x1xf32> to vector<1xf32>
    %94 = vector.shape_cast %93 : vector<1xf32> to vector<1x1x1xf32>
    %95 = vector.extract %94[0, 0, 0] : f32 from vector<1x1x1xf32>
    %c0_24 = arith.constant 0 : index
    %96 = memref.load %arg4[%c0_24] : memref<1xf32, #tpu.memory_space<smem>>
    memref.store %95, %arg4[%c0_24] : memref<1xf32, #tpu.memory_space<smem>>
    return
  }
}

</mosaic_0001>

<bundles_post_ra>
// kernel: mpnet_forward.1
= control target key start
LH: loop header
LB: loop body
LE: loop exit
PB: predicated region body
PF: predicated region fallthrough
CT: control target
= control target key end

     0   :  { %s848_s0 = inlined_call_operand.vmem [shape: f32[16,4], index: 0, kind: input, shape index: {}]   ;;  %s849_s1 = inlined_call_operand.vmem [shape: f32[16,8], index: 1, kind: input, shape index: {}]   ;;  %s850_s2 = inlined_call_operand.vmem [shape: bf16[16,16], index: 2, kind: input, shape index: {}]   ;;  %s851_s3 = inlined_call_operand.vmem [shape: f32[8,120], index: 3, kind: input, shape index: {}]   ;;  %s852_s4 = inlined_call_operand.hbm [shape: f32[1], index: 4, kind: output, shape index: {}]  }
   0x1   :  { %v748_v0 = vld [vmem:[%s851_s3] sm:$0xff] }
   0x2   :  { %9 = vsyncpa [#allocation3], 0  ;;  %s703_s17 = smov 112   ;;  %vm38_vm0 = vcmask 1043456   ;;  %v756_v1 = vperm.slane %v748_v0, 0  ;;  %s704_s18 = smov 96  }
   0x3   :  { %65 = vrot.lane.b32.xlu0 %v748_v0, %s703_s17  ;;  %631 = vmatpush.msk.msra.mxu3 %vm38_vm0, %v748_v0  ;;  %s705_s19 = smov 72   ;;  %s706_s3 = smov 120   ;;  %v766_v2 = vld [vmem:[%s849_s1 + $0x8] sm:$0xff]  ;;  %vm31_vm1 = vcmask 31744   ;;  %v771_v3 = vld [vmem:[%s849_s1] sm:$0xff]  ;;  %vm107_vm2 = vcmask 130048  }
   0x4   :  { %600 = vmatpush.msk.msra.mxu0 %vm38_vm0, %v748_v0  ;;  %132 = vrot.lane.b32.xlu2 %v756_v1, %s705_s19  ;;  %s707_s20 = smov 80   ;;  %v782_v5 = vld [vmem:[%s850_s2] sm:$0xff]  ;;  %v20_v6 = vld [vmem:[%s848_s0 + $0x8] sm:$0xff]  ;;  %s708_s30 = smov 64   ;;  %vm135_vm3 = vcmask 64512  }
   0x5   :  { %28 = vrot.lane.b32.xlu1 %v756_v1, %s706_s3  ;;  %602 = vmatmul.msk.f32.vlgmr.msra.gmra.mxu3 %vm31_vm1, %v20_v6  ;;  %v19_v7 = vld [vmem:[%s848_s0] sm:$0xff]  ;;  %s709_s0 = smov 8   ;;  %s710_s2 = smov 48  }
   0x6   :  { %601 = vmatmul.msk.f32.vlgmr.msra.gmra.mxu0 %vm31_vm1, %v19_v7  ;;  %s711_s5 = smov 40   ;;  %s712_s6 = smov 56  }
   0x7   :  { %s713_s7 = smov 32   ;;  %s714_s8 = smov 24  }
   0x8   :  { %s715_s9 = smov 124   ;;  %s716_s10 = smov 4  }
   0x9   :  { %s717_s12 = smov 1e-16   ;;  %s718_s17 = smov 16  }
   0xa   :  { %s719_s21 = smov [#allocation2]  }
   0xb   :  { %67 = vrot.lane.b32.xlu0 %v756_v1, %s704_s18 }
   0xd   :  { %129 = vrot.lane.b32.xlu1 %v748_v0, %s707_s20 }
  0x2a   :  { %167 = vxpose.xlu2.c.b16.start.end [1/1] (short) (narrow) %v782_v5, 16 }
  0x5e   :  { %v133_v16 = vpop.permute.xlu2 %132 }
  0x75   :  { %v66_v4 = vpop.permute.xlu0 %65 }
  0x76   :  { %603 = vmatpush.msk.msra.mxu1 %vm38_vm0, %v66_v4  ;;  %632 = vmatpush.msk.msra.mxu2 %vm38_vm0, %v66_v4 }
  0x77   :  { %605 = vmatmul.msk.f32.vlgmr.msra.gmra.mxu2 %vm31_vm1, %v766_v2  ;;  %604 = vmatmul.msk.f32.vlgmr.msra.gmra.mxu1 %vm31_vm1, %v771_v3  ;;  %v29_v8 = vpop.permute.xlu1 %28 }
  0x7d   :  { %v68_v10 = vpop.permute.xlu0 %67 }
  0x7f   :  { %v130_v9 = vpop.permute.xlu1 %129 }
  0x80   :  { %157 = vmatpush.msrb.mxu3 %v130_v9 }
  0x83   :  { %v59_v18 = vpop.f32.mrf.mxu0 }
  0x84   :  { %v60_v19 = vadd.f32 %v59_v18, %v29_v8 }
  0x88   :  { %v62_v24 = vpop.f32.mrf.mxu3 }
  0x89   :  { %v63_v26 = vadd.f32 %v62_v24, %v29_v8 }
  0x93   :  { %296 = vrot.lane.b32.xlu2 %v748_v0, %s708_s30 }
  0xcb   :  { %v806_v17 = vpop.trf.xlu2 }
  0xed   :  { %v297_v20 = vpop.permute.xlu2 %296 }
  0xee   :  { %323 = vmatpush.msrb.mxu1 %v297_v20 }
  0xf4   :  { %v95_v11 = vpop.f32.mrf.mxu1 }
  0xf5   :  { %v794_v12 = vadd.f32 %v95_v11, %v68_v10 }
  0xf7   :  { %202 = vrot.lane.b32.xlu0 %v794_v12, %s706_s3 }
  0xfa   :  { %v98_v13 = vpop.f32.mrf.mxu2 }
  0xfb   :  { %v798_v14 = vadd.f32 %v98_v13, %v68_v10 }
  0xfd   :  { %204 = vrot.lane.b32.xlu1 %v798_v14, %s706_s3  ;;  %v101_v15 = vpack.c.bf16 %v798_v14, %v794_v12 }
  0xff   :  { %118 = vmatpush.bf16.msrb.mxu2 %v101_v15 }
 0x102   :  { %610 = vmatmul.msk.bf16.vlgmr.msrb.gmra.mxu2 %vm107_vm2, %v782_v5 }
 0x169   :  { %v203_v60 = vpop.permute.xlu0 %202 }
 0x16f   :  { %v205_v63 = vpop.permute.xlu1 %204 }
 0x185   :  { %v120_v21 = vpop.f32.mrf.mxu2 }
 0x186   :  { %v125_v22 = vmul.f32 %v120_v21, %v60_v19 }
 0x188   :  { %v127_v23 = vadd.f32 %v125_v22, %v60_v19 }
 0x18a   :  { %v614_v25 = vmul.f32 -1.442695, %v127_v23  ;;  %611 = vmatmul.msk.f32.vlgmr.msrb.gmra.mxu3 %vm135_vm3, %v127_v23 }
 0x18c   :  { %659 = vpow2.f32 %v614_v25 }
 0x18d   :  { %v122_v27 = vpop.f32.mrf.mxu2 }
 0x18e   :  { %v126_v28 = vmul.f32 %v122_v27, %v63_v26 }
 0x190   :  { %v128_v29 = vadd.f32 %v126_v28, %v63_v26 }
 0x192   :  { %v660_v30 = vpop.eup %659  ;;  %v615_v31 = vmul.f32 -1.442695, %v128_v29  ;;  %612 = vmatmul.msk.f32.gmra.mxu3 %vm135_vm3, %v128_v29 }
 0x193   :  { %v226_v32 = vadd.f32 1.0, %v660_v30 }
 0x194   :  { %661 = vpow2.f32 %v615_v31 }
 0x195   :  { %663 = vrcp.f32 %v226_v32  ;;  %v239_v38 = vand.u32 2147483648, %v226_v32  ;;  %v237_v40 = vand.u32 2147483647, %v226_v32  ;;  %vm233_vm5 = vweird.f32 %v226_v32 }
 0x197   :  { %v240_v43 = vor.u32 1.1754944e-38, %v239_v38  ;;  %vm238_vm7 = vcmp.eq.f32.partialorder %v237_v40, 8.507059e+37 }
 0x19a   :  { %v662_v33 = vpop.eup %661 }
 0x19b   :  { %v664_v34 = vpop.eup %663  ;;  %v227_v35 = vadd.f32 1.0, %v662_v33 }
 0x19c   :  { %v229_v36 = vmul.f32 %v664_v34, %v226_v32  ;;  %vm234_vm4 = vweird.f32 %v664_v34 }
 0x19d   :  { %665 = vrcp.f32 %v227_v35  ;;  %vm235_vm6 = vmor %vm233_vm5, %vm234_vm4  ;;  %v254_v48 = vand.u32 2147483648, %v227_v35  ;;  %v252_v50 = vand.u32 2147483647, %v227_v35  ;;  %vm248_vm9 = vweird.f32 %v227_v35 }
 0x19e   :  { %v230_v37 = vsub.f32 1.0, %v229_v36 }
 0x19f   :  { %v255_v52 = vor.u32 1.1754944e-38, %v254_v48  ;;  %vm253_vm11 = vcmp.eq.f32.partialorder %v252_v50, 8.507059e+37 }
 0x1a0   :  { %v231_v39 = vmul.f32 %v664_v34, %v230_v37 }
 0x1a2   :  { %v232_v41 = vadd.f32 %v664_v34, %v231_v39 }
 0x1a3   :  { %v666_v42 = vpop.eup %665 }
 0x1a4   :  { %v236_v44 = vsel %vm235_vm6, %v664_v34, %v232_v41  ;;  %v244_v45 = vmul.f32 %v666_v42, %v227_v35  ;;  %vm249_vm8 = vweird.f32 %v666_v42 }
 0x1a5   :  { %v241_v46 = vsel %vm238_vm7, %v240_v43, %v236_v44  ;;  %vm250_vm10 = vmor %vm248_vm9, %vm249_vm8 }
 0x1a6   :  { %618 = vmatmul.msk.f32.vlgmr.msrb.gmra.mxu1 %vm135_vm3, %v241_v46  ;;  %v245_v47 = vsub.f32 1.0, %v244_v45 }
 0x1a8   :  { %v246_v49 = vmul.f32 %v666_v42, %v245_v47 }
 0x1aa   :  { %v247_v51 = vadd.f32 %v666_v42, %v246_v49 }
 0x1ac   :  { %v251_v53 = vsel %vm250_vm10, %v666_v42, %v247_v51 }
 0x1ad   :  { %v256_v54 = vsel %vm253_vm11, %v255_v52, %v251_v53 }
 0x1ae   :  { %619 = vmatmul.msk.f32.gmra.mxu1 %vm135_vm3, %v256_v54 }
 0x20d   :  { %v159_v55 = vpop.f32.mrf.mxu3 }
 0x20e   :  { %v160_v57 = vadd.f32 %v159_v55, %v133_v16 }
 0x215   :  { %v162_v56 = vpop.f32.mrf.mxu3 }
 0x216   :  { %v163_v58 = vadd.f32 %v162_v56, %v133_v16 }
 0x218   :  { %v165_v59 = vpack.c.bf16 %v163_v58, %v160_v57 }
 0x21a   :  { %193 = vmatpush.bf16.msrb.mxu0 %v165_v59 }
 0x21d   :  { %613 = vmatmul.msk.bf16.vlgmr.msrb.gmra.mxu0 %vm107_vm2, %v806_v17 }
 0x29a   :  { %v195_v61 = vpop.f32.mrf.mxu0 }
 0x29b   :  { %v208_v62 = vmul.f32 %v203_v60, %v195_v61 }
 0x29d   :  { %212 = vrot.lane.b32.xlu0 %v208_v62, %s709_s0 }
 0x2a2   :  { %v197_v4 = vpop.f32.mrf.mxu0 }
 0x2a3   :  { %v209_v6 = vmul.f32 %v205_v63, %v197_v4 }
 0x2a5   :  { %214 = vrot.lane.b32.xlu1 %v209_v6, %s709_s0  ;;  %337 = vrot.lane.b32.xlu0 %v748_v0, %s710_s2 }
 0x30f   :  { %v213_v7 = vpop.permute.xlu0 %212 }
 0x310   :  { %v218_v8 = vadd.f32 %v213_v7, %v794_v12 }
 0x312   :  { %v616_v9 = vmul.f32 -1.442695, %v218_v8 }
 0x314   :  { %667 = vpow2.f32 %v616_v9 }
 0x317   :  { %v215_v10 = vpop.permute.xlu1 %214  ;;  %v338_v18 = vpop.permute.xlu0 %337 }
 0x318   :  { %v219_v11 = vadd.f32 %v215_v10, %v798_v14  ;;  %362 = vmatpush.msra.mxu3 %v338_v18 }
 0x31a   :  { %v668_v13 = vpop.eup %667  ;;  %v617_v15 = vmul.f32 -1.442695, %v219_v11 }
 0x31b   :  { %v264_v16 = vadd.f32 1.0, %v668_v13 }
 0x31c   :  { %669 = vpow2.f32 %v617_v15 }
 0x31d   :  { %671 = vrcp.f32 %v264_v16  ;;  %v277_v24 = vand.u32 2147483648, %v264_v16  ;;  %v275_v25 = vand.u32 2147483647, %v264_v16  ;;  %vm271_vm13 = vweird.f32 %v264_v16 }
 0x31f   :  { %v278_v27 = vor.u32 1.1754944e-38, %v277_v24  ;;  %vm276_vm15 = vcmp.eq.f32.partialorder %v275_v25, 8.507059e+37 }
 0x322   :  { %v670_v19 = vpop.eup %669 }
 0x323   :  { %v672_v20 = vpop.eup %671  ;;  %v265_v21 = vadd.f32 1.0, %v670_v19 }
 0x324   :  { %v267_v22 = vmul.f32 %v672_v20, %v264_v16  ;;  %vm272_vm12 = vweird.f32 %v672_v20 }
 0x325   :  { %673 = vrcp.f32 %v265_v21  ;;  %vm273_vm14 = vmor %vm271_vm13, %vm272_vm12  ;;  %v292_v32 = vand.u32 2147483648, %v265_v21  ;;  %v290_v34 = vand.u32 2147483647, %v265_v21  ;;  %vm286_vm5 = vweird.f32 %v265_v21 }
 0x326   :  { %v268_v23 = vsub.f32 1.0, %v267_v22 }
 0x327   :  { %v293_v36 = vor.u32 1.1754944e-38, %v292_v32  ;;  %vm291_vm7 = vcmp.eq.f32.partialorder %v290_v34, 8.507059e+37 }
 0x328   :  { %v269_v12 = vmul.f32 %v672_v20, %v268_v23 }
 0x32a   :  { %v270_v26 = vadd.f32 %v672_v20, %v269_v12 }
 0x32b   :  { %v674_v14 = vpop.eup %673 }
 0x32c   :  { %v274_v28 = vsel %vm273_vm14, %v672_v20, %v270_v26  ;;  %v282_v29 = vmul.f32 %v674_v14, %v265_v21  ;;  %vm287_vm4 = vweird.f32 %v674_v14 }
 0x32d   :  { %v279_v30 = vsel %vm276_vm15, %v278_v27, %v274_v28  ;;  %vm288_vm6 = vmor %vm286_vm5, %vm287_vm4 }
 0x32e   :  { %333 = vrot.lane.b32.xlu1 %v279_v30, %s706_s3  ;;  %v283_v31 = vsub.f32 1.0, %v282_v29 }
 0x330   :  { %v284_v33 = vmul.f32 %v674_v14, %v283_v31 }
 0x332   :  { %v285_v35 = vadd.f32 %v674_v14, %v284_v33 }
 0x334   :  { %v289_v37 = vsel %vm288_vm6, %v674_v14, %v285_v35 }
 0x335   :  { %v294_v38 = vsel %vm291_vm7, %v293_v36, %v289_v37 }
 0x336   :  { %335 = vrot.lane.b32.xlu0 %v294_v38, %s706_s3  ;;  %340 = vrot.lane.b32.xlu1 %v756_v1, %s711_s5  ;;  %s590_s3 = sshll.u32 %s852_s4, 4  ;;  %s591_s3 = int_to_ptr.hbm [resolvable:$true] %s590_s3 }
 0x33e   :  { %299 = vrot.lane.b32.xlu0 %v756_v1, %s712_s6  ;;  %389 = vrot.lane.b32.xlu1 %v748_v0, %s713_s7 }
 0x346   :  { %391 = vrot.lane.b32.xlu0 %v756_v1, %s714_s8  ;;  %v325_v1 = vpop.f32.mrf.mxu1 }
 0x34e   :  { %v328_v53 = vpop.f32.mrf.mxu1 }
 0x3a0   :  { %v334_v39 = vpop.permute.xlu1 %333 }
 0x3a1   :  { %620 = vmatmul.msk.f32.vlgmr.msra.gmra.mxu3 %vm135_vm3, %v334_v39 }
 0x3a8   :  { %v336_v40 = vpop.permute.xlu0 %335  ;;  %v341_v41 = vpop.permute.xlu1 %340 }
 0x3a9   :  { %621 = vmatmul.msk.f32.gmra.mxu3 %vm135_vm3, %v336_v40 }
 0x3b0   :  { %v390_v42 = vpop.permute.xlu1 %389  ;;  %v300_v48 = vpop.permute.xlu0 %299 }
 0x3b1   :  { %623 = vmatpush.msk.msra.mxu0 %vm38_vm0, %v390_v42  ;;  %v326_v49 = vadd.f32 %v325_v1, %v300_v48  ;;  %v329_v54 = vadd.f32 %v328_v53, %v300_v48 }
 0x3b8   :  { %v392_v59 = vpop.permute.xlu0 %391 }
 0x424   :  { %v364_v43 = vpop.f32.mrf.mxu3 }
 0x425   :  { %v365_v44 = vadd.f32 %v364_v43, %v341_v41 }
 0x427   :  { %442 = vrot.lane.b32.xlu1 %v365_v44, %s715_s9 }
 0x42c   :  { %v367_v45 = vpop.f32.mrf.mxu3 }
 0x42d   :  { %v368_v46 = vadd.f32 %v367_v45, %v341_v41 }
 0x42f   :  { %v370_v47 = vpack.c.bf16 %v368_v46, %v365_v44  ;;  %444 = vrot.lane.b32.xlu0 %v368_v46, %s715_s9 }
 0x431   :  { %378 = vmatpush.bf16.msra.mxu2 %v370_v47 }
 0x434   :  { %622 = vmatmul.msk.bf16.vlgmr.msra.gmra.mxu2 %vm107_vm2, %v782_v5 }
 0x499   :  { %v443_v63 = vpop.permute.xlu1 %442 }
 0x4a1   :  { %v445_v7 = vpop.permute.xlu0 %444 }
 0x4b7   :  { %v380_v50 = vpop.f32.mrf.mxu2 }
 0x4b8   :  { %v385_v51 = vmul.f32 %v380_v50, %v326_v49 }
 0x4ba   :  { %v387_v52 = vadd.f32 %v385_v51, %v326_v49 }
 0x4bc   :  { %624 = vmatmul.msk.f32.vlgmr.msra.gmra.mxu0 %vm31_vm1, %v387_v52 }
 0x4bf   :  { %v382_v55 = vpop.f32.mrf.mxu2 }
 0x4c0   :  { %v386_v56 = vmul.f32 %v382_v55, %v329_v54 }
 0x4c2   :  { %v388_v57 = vadd.f32 %v386_v56, %v329_v54 }
 0x4c4   :  { %625 = vmatmul.msk.f32.gmra.mxu0 %vm31_vm1, %v388_v57 }
 0x539   :  { %v419_v58 = vpop.f32.mrf.mxu0 }
 0x53a   :  { %v420_v61 = vadd.f32 %v419_v58, %v392_v59 }
 0x541   :  { %v422_v60 = vpop.f32.mrf.mxu0 }
 0x542   :  { %v423_v5 = vadd.f32 %v422_v60, %v392_v59 }
 0x544   :  { %v425_v62 = vpack.c.bf16 %v423_v5, %v420_v61 }
 0x546   :  { %433 = vmatpush.bf16.msra.mxu1 %v425_v62 }
 0x549   :  { %626 = vmatmul.msk.bf16.vlgmr.msra.gmra.mxu1 %vm107_vm2, %v806_v17 }
 0x5c6   :  { %v435_v4 = vpop.f32.mrf.mxu1 }
 0x5c7   :  { %v448_v6 = vmul.f32 %v443_v63, %v435_v4 }
 0x5c9   :  { %452 = vrot.lane.b32.xlu1 %v448_v6, %s716_s10 }
 0x5ce   :  { %v437_v8 = vpop.f32.mrf.mxu1 }
 0x5cf   :  { %v449_v9 = vmul.f32 %v445_v7, %v437_v8 }
 0x5d1   :  { %454 = vrot.lane.b32.xlu0 %v449_v9, %s716_s10 }
 0x63b   :  { %v453_v10 = vpop.permute.xlu1 %452 }
 0x63c   :  { %v458_v11 = vadd.f32 %v453_v10, %v365_v44 }
 0x63e   :  { %v627_v13 = vmul.f32 -1.442695, %v458_v11 }
 0x640   :  { %675 = vpow2.f32 %v627_v13 }
 0x643   :  { %v455_v15 = vpop.permute.xlu0 %454 }
 0x644   :  { %v459_v16 = vadd.f32 %v455_v15, %v368_v46 }
 0x646   :  { %v676_v18 = vpop.eup %675  ;;  %v628_v19 = vmul.f32 -1.442695, %v459_v16 }
 0x647   :  { %v466_v20 = vadd.f32 1.0, %v676_v18 }
 0x648   :  { %677 = vpow2.f32 %v628_v19 }
 0x649   :  { %679 = vrcp.f32 %v466_v20  ;;  %v479_v12 = vand.u32 2147483648, %v466_v20  ;;  %v477_v26 = vand.u32 2147483647, %v466_v20  ;;  %vm473_vm2 = vweird.f32 %v466_v20 }
 0x64b   :  { %v480_v28 = vor.u32 1.1754944e-38, %v479_v12  ;;  %vm478_vm8 = vcmp.eq.f32.partialorder %v477_v26, 8.507059e+37 }
 0x64e   :  { %v678_v17 = vpop.eup %677 }
 0x64f   :  { %v680_v21 = vpop.eup %679  ;;  %v467_v22 = vadd.f32 1.0, %v678_v17 }
 0x650   :  { %v469_v23 = vmul.f32 %v680_v21, %v466_v20  ;;  %vm474_vm0 = vweird.f32 %v680_v21 }
 0x651   :  { %681 = vrcp.f32 %v467_v22  ;;  %vm475_vm3 = vmor %vm473_vm2, %vm474_vm0  ;;  %v494_v34 = vand.u32 2147483648, %v467_v22  ;;  %v492_v36 = vand.u32 2147483647, %v467_v22  ;;  %vm488_vm10 = vweird.f32 %v467_v22 }
 0x652   :  { %v470_v24 = vsub.f32 1.0, %v469_v23 }
 0x653   :  { %v495_v38 = vor.u32 1.1754944e-38, %v494_v34  ;;  %vm493_vm12 = vcmp.eq.f32.partialorder %v492_v36, 8.507059e+37 }
 0x654   :  { %v471_v25 = vmul.f32 %v680_v21, %v470_v24 }
 0x656   :  { %v472_v14 = vadd.f32 %v680_v21, %v471_v25 }
 0x657   :  { %v682_v27 = vpop.eup %681 }
 0x658   :  { %v484_v29 = vmul.f32 %v682_v27, %v467_v22  ;;  %v476_v30 = vsel %vm475_vm3, %v680_v21, %v472_v14  ;;  %vm489_vm9 = vweird.f32 %v682_v27 }
 0x659   :  { %v481_v31 = vsel %vm478_vm8, %v480_v28, %v476_v30  ;;  %vm490_vm11 = vmor %vm488_vm10, %vm489_vm9 }
 0x65a   :  { %v498_v32 = vmul.f32 %v481_v31, %v481_v31  ;;  %v485_v33 = vsub.f32 1.0, %v484_v29  ;;  %v520_v42 = vmul.f32 %v481_v31, %v771_v3 }
 0x65c   :  { %502 = vrot.lane.b32.xlu1 %v498_v32, %s715_s9  ;;  %v486_v35 = vmul.f32 %v682_v27, %v485_v33 }
 0x65e   :  { %v487_v37 = vadd.f32 %v682_v27, %v486_v35 }
 0x660   :  { %v491_v39 = vsel %vm490_vm11, %v682_v27, %v487_v37 }
 0x661   :  { %v496_v40 = vsel %vm493_vm12, %v495_v38, %v491_v39 }
 0x662   :  { %v499_v41 = vmul.f32 %v496_v40, %v496_v40  ;;  %v521_v43 = vmul.f32 %v496_v40, %v766_v2 }
 0x664   :  { %504 = vrot.lane.b32.xlu0 %v499_v41, %s715_s9 }
 0x66c   :  { %524 = vrot.lane.b32.xlu0 %v520_v42, %s715_s9 }
 0x674   :  { %526 = vrot.lane.b32.xlu0 %v521_v43, %s715_s9 }
 0x6ce   :  { %v503_v44 = vpop.permute.xlu1 %502 }
 0x6cf   :  { %v508_v46 = vsel %vm31_vm1, %v503_v44, 0.0 }
 0x6d6   :  { %v505_v45 = vpop.permute.xlu0 %504 }
 0x6d7   :  { %v509_v47 = vsel %vm31_vm1, %v505_v45, 0.0 }
 0x6d8   :  { %v510_v1 = vadd.f32 %v509_v47, %v508_v46 }
 0x6da   :  { %511 = vadd.xlane.f32.xlu1 %v510_v1 }
 0x6de   :  { %v525_v48 = vpop.permute.xlu0 %524 }
 0x6df   :  { %v530_v50 = vsel %vm31_vm1, %v525_v48, 0.0 }
 0x6e6   :  { %v527_v49 = vpop.permute.xlu0 %526 }
 0x6e7   :  { %v531_v3 = vsel %vm31_vm1, %v527_v49, 0.0 }
 0x6e8   :  { %v532_v51 = vadd.f32 %v531_v3, %v530_v50 }
 0x6ea   :  { %533 = vadd.xlane.f32.xlu0 %v532_v51 }
 0x74d   :  { %v512_v52 = vpop.xlane.xlu1 %511 }
 0x74e   :  { %v513_v2 = vrot.slane %v512_v52, 4 }
 0x750   :  { %v514_v53 = vadd.f32 %v513_v2, %v512_v52 }
 0x752   :  { %v515_v54 = vrot.slane %v514_v53, 2 }
 0x754   :  { %v516_v55 = vadd.f32 %v515_v54, %v514_v53 }
 0x756   :  { %v517_v56 = vrot.slane %v516_v55, 1 }
 0x758   :  { %v518_v57 = vadd.f32 %v517_v56, %v516_v55 }
 0x75a   :  { %633 = vpush %v518_v57 }
 0x75d   :  { %v534_v58 = vpop.xlane.xlu0 %533 }
 0x75e   :  { %v535_v59 = vrot.slane %v534_v58, 4 }
 0x760   :  { %v536_v60 = vadd.f32 %v535_v59, %v534_v58 }
 0x762   :  { %v537_v61 = vrot.slane %v536_v60, 2 }
 0x764   :  { %v538_v5 = vadd.f32 %v537_v61, %v536_v60 }
 0x766   :  { %v539_v62 = vrot.slane %v538_v5, 1 }
 0x768   :  { %v540_v63 = vadd.f32 %v539_v62, %v538_v5 }
 0x76a   :  { %635 = vpush %v540_v63 }
 0x78b   :  { %s634_s11 = spop %633 }
 0x78c   :  { %s542_s13 = smax.f32 %s717_s12, %s634_s11 }
 0x78d   :  { %v543_v4 = vstv %s542_s13 }
 0x78e   :  { %683 = vrsqrt.f32 %v543_v4  ;;  %vm550_vm13 = vweird.f32 %v543_v4 }
 0x794   :  { %v684_v6 = vpop.eup %683 }
 0x795   :  { %v545_v7 = vmul.f32 %v684_v6, %v543_v4  ;;  %vm551_vm1 = vweird.f32 %v684_v6 }
 0x796   :  { %vm552_vm14 = vmor %vm550_vm13, %vm551_vm1 }
 0x797   :  { %v546_v8 = vmul.f32 %v684_v6, %v545_v7 }
 0x799   :  { %v547_v9 = vmul.f32 0.5, %v546_v8 }
 0x79b   :  { %v548_v10 = vsub.f32 1.5, %v547_v9  ;;  %s636_s14 = spop %635 }
 0x79d   :  { %v549_v11 = vmul.f32 %v684_v6, %v548_v10 }
 0x79f   :  { %v553_v13 = vsel %vm552_vm14, %v684_v6, %v549_v11 }
 0x7a0   :  { %637 = vpush %v553_v13 }
 0x7d1   :  { %s638_s15 = spop %637 }
 0x7d2   :  { %s555_s16 = smul.f32 %s638_s15, %s636_s14 }
 0x7d4   :  { %v556_v15 = vstv %s555_s16 }
 0x7d5   :  { %v557_v16 = vadd.f32 %v556_v15, %v748_v0 }
 0x7d7   :  { %v629_v18 = vmul.f32 -1.442695, %v557_v16 }
 0x7d9   :  { %685 = vpow2.f32 %v629_v18 }
 0x7df   :  { %v686_v19 = vpop.eup %685 }
 0x7e0   :  { %v561_v20 = vadd.f32 1.0, %v686_v19 }
 0x7e2   :  { %687 = vrcp.f32 %v561_v20  ;;  %v573_v23 = vand.u32 2147483648, %v561_v20  ;;  %v571_v12 = vand.u32 2147483647, %v561_v20  ;;  %vm567_vm4 = vweird.f32 %v561_v20 }
 0x7e4   :  { %v574_v26 = vor.u32 1.1754944e-38, %v573_v23  ;;  %vm572_vm6 = vcmp.eq.f32.partialorder %v571_v12, 8.507059e+37 }
 0x7e8   :  { %v688_v17 = vpop.eup %687 }
 0x7e9   :  { %v563_v21 = vmul.f32 %v688_v17, %v561_v20  ;;  %vm568_vm15 = vweird.f32 %v688_v17 }
 0x7ea   :  { %vm569_vm5 = vmor %vm567_vm4, %vm568_vm15 }
 0x7eb   :  { %v564_v22 = vsub.f32 1.0, %v563_v21 }
 0x7ed   :  { %v565_v24 = vmul.f32 %v688_v17, %v564_v22 }
 0x7ef   :  { %v566_v25 = vadd.f32 %v688_v17, %v565_v24 }
 0x7f1   :  { %v570_v14 = vsel %vm569_vm5, %v688_v17, %v566_v25 }
 0x7f2   :  { %v575_v27 = vsel %vm572_vm6, %v574_v26, %v570_v14 }
 0x7f3   :  { %579 = vrot.lane.b32.xlu1 %v575_v27, %s718_s17 }
 0x865   :  { %v580_v0 = vpop.permute.xlu1 %579 }
 0x866   :  { %639 = vpush %v580_v0 }
 0x897   :  { %s640_s20 = spop %639 }
 0x898   :  { %584 = sst [smem:[#allocation2]] %s640_s20 }
 0x899   :  { %593 = dma.smem_to_hbm %s719_s21, 16, %s591_s3, [#allocation3]  }
 0x89a   :  { %701 = dma.done.wait [#allocation3], 16  }
 0x89b   :  { %702 = vsyncadd [#allocation3], 4294967280 }
 0x89c   :  { %598 = sfence }
 0x89d   :  { %599 = vsyncpa [#allocation3], 1 }

</bundles_post_ra>
